<compile_context>
chip_gen: v6e
topology: v6e:2x2x1
jax: 0.10.0
libtpu: 0.0.40
codegen_flags: <defaults>
</compile_context>

<pallas_src>
import jax
import jax.numpy as jnp
from jax.experimental import pallas as pl
from jax.experimental.pallas import tpu as pltpu


def _pssm_proj_kernel(x_ref, w_ref, b_ref, o_ref):
    # x_ref: (1, tS, K)    -- one batch's row tile of the PSSM input
    # w_ref: (1, K, C)     -- weights of the current layer (x @ W layout)
    # b_ref: (1, 1, C)     -- bias of the current layer
    # o_ref: (1, 1, tS, C) -- output tile, already in (B, L, S, C) layout
    y = jnp.dot(x_ref[0], w_ref[0], preferred_element_type=jnp.float32)
    o_ref[0, 0] = (y + b_ref[0]).astype(o_ref.dtype)


def _row_tile(s, c, k, *, budget_bytes=8 << 20, cap=2048):
    """VMEM-budget-driven S tile.

    Double-buffered f32 x-row + out-row bytes per row is 2*4*(c+k); keep the
    pipelined buffers under `budget_bytes`.  The returned tile is either the
    full S (always layout-legal: block dim == array dim) or a multiple of 8
    (satisfies the (8, 128) sublane rule).  Non-dividing S is handled by
    pl.cdiv + Pallas boundary masking at the last grid step.
    """
    per_row = 2 * 4 * (c + k)
    if s <= cap and s * per_row <= budget_bytes:
        return s
    t = min(cap, max(8, (budget_bytes // per_row) // 8 * 8))
    return s if t >= s else int(t)


def pssm_projector(x, weights, biases, *, out_dtype=jnp.float32):
    """x: (B, S, 21) f32; weights: (L, 21, C) f32 in `x @ W` layout (torch's
    nn.Linear stores (C, 21) -- transpose before calling); biases: (L, C) f32.
    Returns (B, L, S, C), matching PSSM_Projector.forward.
    """
    B, S, K = x.shape
    L, Kw, C = weights.shape
    assert Kw == K == 21, "weights must be (num_layers, 21, c_m), i.e. x @ W layout"
    assert biases.shape == (L, C)

    b3 = biases.reshape(L, 1, C)  # (1, 1, C) bias blocks are layout-legal
    tS = _row_tile(S, C, K)
    grid = (B, L, pl.cdiv(S, tS))

    cost = pl.CostEstimate(
        flops=2 * B * L * S * K * C,
        transcendentals=0,
        bytes_accessed=4 * (L * B * S * K + L * K * C + L * C + B * L * S * C),
    )

    return pl.pallas_call(
        _pssm_proj_kernel,
        out_shape=jax.ShapeDtypeStruct((B, L, S, C), out_dtype),
        grid_spec=pltpu.PrefetchScalarGridSpec(
            num_scalar_prefetch=0,
            grid=grid,
            in_specs=[
                pl.BlockSpec((1, tS, K), lambda b, l, i: (b, i, 0)),  # x row tile
                pl.BlockSpec((1, K, C), lambda b, l, i: (l, 0, 0)),   # layer weights
                pl.BlockSpec((1, 1, C), lambda b, l, i: (l, 0, 0)),   # layer bias
            ],
            out_specs=pl.BlockSpec((1, 1, tS, C), lambda b, l, i: (b, l, i, 0)),
        ),
        compiler_params=pltpu.CompilerParams(
            dimension_semantics=("parallel", "parallel", "parallel"),
            vmem_limit_bytes=32 * 1024 * 1024,
        ),
        cost_estimate=cost,
    )(x, weights, b3)


def reference(x, weights, biases):
    # out[b, l, s, c] = sum_k x[b, s, k] * weights[l, k, c] + biases[l, c]
    return jnp.einsum("bsk,lkc->blsc", x, weights) + biases[None, :, None, :]


if __name__ == "__main__":
    # Small shapes consistent with the module: batch=2, seq=8, 21 PSSM
    # features, num_layers=3, c_m=32.
    B, S, K = 2, 8, 21
    num_layers, c_m = 3, 32

    key = jax.random.PRNGKey(0)
    kx, kw, kb = jax.random.split(key, 3)

    x = jax.random.normal(kx, (B, S, K), dtype=jnp.float32)
    # torch weight of nn.Linear(21, c_m) is (c_m, 21); we store the transposed
    # (x @ W) layout as (L, 21, c_m).
    weights = jax.random.normal(kw, (num_layers, K, c_m), dtype=jnp.float32) * 0.1
    biases = jax.random.normal(kb, (num_layers, c_m), dtype=jnp.float32) * 0.1

    out = pssm_projector(x, weights, biases)
    out = jax.block_until_ready(out)

    ref = reference(x, weights, biases)
    assert out.shape == (B, num_layers, S, c_m)
    assert jnp.allclose(out, ref, atol=1e-5, rtol=1e-5), "mismatch vs reference"

    print("KERNEL_OK")
</pallas_src>

<mosaic_0001>
module attributes {stable_mosaic.version = 11 : i64} {
  func.func @_pssm_proj_kernel(%arg0: i32, %arg1: i32, %arg2: i32, %arg3: memref<1x8x21xf32, #tpu.memory_space<vmem>>, %arg4: memref<1x21x32xf32, #tpu.memory_space<vmem>>, %arg5: memref<1x1x32xf32, #tpu.memory_space<vmem>>, %arg6: memref<1x1x8x32xf32, #tpu.memory_space<vmem>>) attributes {dimension_semantics = [#tpu.dimension_semantics<parallel>, #tpu.dimension_semantics<parallel>, #tpu.dimension_semantics<parallel>], iteration_bounds = array<i64: 2, 3, 1>, scalar_prefetch = 0 : i64, scratch_operands = 0 : i64, tpu.core_type = #tpu.core_type<tc>, window_params = [{transform_indices = @transform_0, window_bounds = array<i64: 1, 8, 21>}, {transform_indices = @transform_1, window_bounds = array<i64: 1, 21, 32>}, {transform_indices = @transform_2, window_bounds = array<i64: 1, 1, 32>}, {transform_indices = @transform_3, window_bounds = array<i64: 1, 1, 8, 32>}]} {
    %c0 = arith.constant 0 : index
    %c0_0 = arith.constant 0 : index
    %c0_1 = arith.constant 0 : index
    %0 = vector.load %arg3[%c0, %c0_0, %c0_1] : memref<1x8x21xf32, #tpu.memory_space<vmem>>, vector<1x8x21xf32>
    %1 = vector.shape_cast %0 : vector<1x8x21xf32> to vector<8x21xf32>
    %c0_2 = arith.constant 0 : index
    %c0_3 = arith.constant 0 : index
    %c0_4 = arith.constant 0 : index
    %2 = vector.load %arg4[%c0_2, %c0_3, %c0_4] : memref<1x21x32xf32, #tpu.memory_space<vmem>>, vector<1x21x32xf32>
    %3 = vector.shape_cast %2 : vector<1x21x32xf32> to vector<21x32xf32>
    %cst = arith.constant dense<0.000000e+00> : vector<8x32xf32>
    %4 = tpu.matmul %1, %3, %cst {dimension_numbers = #tpu.dot_dimension_numbers<[1], [0], [0], [1], [0, 0, 1, 1], [], []>} : vector<8x21xf32>, vector<21x32xf32>, vector<8x32xf32> -> vector<8x32xf32>
    %c0_5 = arith.constant 0 : index
    %c0_6 = arith.constant 0 : index
    %c0_7 = arith.constant 0 : index
    %5 = vector.load %arg5[%c0_5, %c0_6, %c0_7] : memref<1x1x32xf32, #tpu.memory_space<vmem>>, vector<1x1x32xf32>
    %6 = vector.shape_cast %5 : vector<1x1x32xf32> to vector<1x32xf32>
    %7 = vector.broadcast %6 : vector<1x32xf32> to vector<8x32xf32>
    %8 = arith.addf %4, %7 : vector<8x32xf32>
    %c0_8 = arith.constant 0 : index
    %c0_9 = arith.constant 0 : index
    %c0_10 = arith.constant 0 : index
    %c0_11 = arith.constant 0 : index
    %9 = vector.load %arg6[%c0_8, %c0_9, %c0_10, %c0_11] : memref<1x1x8x32xf32, #tpu.memory_space<vmem>>, vector<1x1x8x32xf32>
    %10 = vector.shape_cast %9 : vector<1x1x8x32xf32> to vector<8x32xf32>
    %11 = vector.shape_cast %8 : vector<8x32xf32> to vector<1x1x8x32xf32>
    tpu.vector_store %arg6[%c0_8, %c0_9, %c0_10, %c0_11], %11 {strides = array<i32>} : memref<1x1x8x32xf32, #tpu.memory_space<vmem>>, vector<1x1x8x32xf32>,
    return
  }
  func.func @transform_0(%arg0: i32, %arg1: i32, %arg2: i32) -> (i32, i32, i32) {
    %c0_i32 = arith.constant 0 : i32
    %c0_i32_0 = arith.constant 0 : i32
    return %arg0, %arg2, %c0_i32 : i32, i32, i32
  }
  func.func @transform_1(%arg0: i32, %arg1: i32, %arg2: i32) -> (i32, i32, i32) {
    %c0_i32 = arith.constant 0 : i32
    %c0_i32_0 = arith.constant 0 : i32
    %c0_i32_1 = arith.constant 0 : i32
    return %arg1, %c0_i32, %c0_i32_0 : i32, i32, i32
  }
  func.func @transform_2(%arg0: i32, %arg1: i32, %arg2: i32) -> (i32, i32, i32) {
    %c0_i32 = arith.constant 0 : i32
    %c0_i32_0 = arith.constant 0 : i32
    %c0_i32_1 = arith.constant 0 : i32
    return %arg1, %c0_i32, %c0_i32_0 : i32, i32, i32
  }
  func.func @transform_3(%arg0: i32, %arg1: i32, %arg2: i32) -> (i32, i32, i32, i32) {
    %c0_i32 = arith.constant 0 : i32
    %c0_i32_0 = arith.constant 0 : i32
    return %arg0, %arg1, %arg2, %c0_i32 : i32, i32, i32, i32
  }
}

</mosaic_0001>

<bundles_post_ra>
// kernel: tpu_custom_call.1
= control target key start
LH: loop header
LB: loop body
LE: loop exit
PB: predicated region body
PF: predicated region fallthrough
CT: control target
= control target key end

     0   :  { %s1158_s0 = inlined_call_operand.hbm [shape: f32[2,8,21], index: 0, kind: input, shape index: {}]   ;;  %s1159_s1 = inlined_call_operand.hbm [shape: f32[3,21,32], index: 1, kind: input, shape index: {}]   ;;  %s1160_s2 = inlined_call_operand.vmem [shape: f32[3,1,32], index: 2, kind: input, shape index: {}]   ;;  %s1161_s3 = inlined_call_operand.hbm [shape: f32[2,3,8,32], index: 3, kind: output, shape index: {}]  }
   0x1   :  { %1174 = sst [smem:[#allocation19_spill]] %s1158_s0 }
   0x2   :  { %1175 = sst [smem:[#allocation20_spill]] %s1160_s2 }
   0x3   :  { %1176 = sst [smem:[#allocation21_spill]] %s1161_s3 }
   0x4   :  { %8 = vsyncpa [#allocation3], 0 }
   0x5   :  { %10 = vsyncpa [#allocation3 + $0x1], 0 }
   0x6   :  { %11 = vsyncpa [#allocation6], 0 }
   0x7   :  { %13 = vsyncpa [#allocation6 + $0x1], 0 }
   0x8   :  { %14 = vsyncpa [#allocation4], 0 }
   0x9   :  { %16 = vsyncpa [#allocation4 + $0x1], 0  ;;  %s896_s12 = smov 0   ;;  %s898_s13 = smov 0  }
   0xa   :  { %s900_s14 = smov 0   ;;  %s902_s15 = smov 0  }
   0xb   :  { %s904_s16 = smov 0   ;;  %s906_s17 = smov 0  }
   0xc   :  { %s908_s18 = smov 0   ;;  %s910_s19 = smov 0  }
   0xd   :  { %s912_s20 = smov 0   ;;  %s914_s21 = smov 0  }
   0xe   :  { %s916_s22 = smov 0   ;;  %s918_s23 = smov 0  }
   0xf   :  { %s920_s24 = smov 0   ;;  %s922_s25 = smov 0  }
  0x10 LB: > { %1177 = sst [smem:[#allocation11_spill]] %s815_s12  ;;  %s494_s26 = sadd.s32 4294967295, %s867_s25   ;;  %s867_s25 = sphi %s922_s25, %s22_s25   ;;  %s863_s24 = sphi %s920_s24, %s1224_s24   ;;  %s859_s23 = sphi %s918_s23, %s1223_s23   ;;  %s855_s22 = sphi %s916_s22, %s1222_s22   ;;  %s851_s21 = sphi %s914_s21, %s1209_s21   ;;  %s847_s20 = sphi %s912_s20, %s1221_s20   ;;  %s843_s19 = sphi %s910_s19, %s1220_s19   ;;  %s839_s18 = sphi %s908_s18, %s1219_s18   ;;  %s835_s17 = sphi %s906_s17, %s1218_s17   ;;  %s831_s16 = sphi %s904_s16, %s1217_s16   ;;  %s827_s15 = sphi %s902_s15, %s1216_s15   ;;  %s823_s14 = sphi %s900_s14, %s1215_s14   ;;  %s819_s13 = sphi %s898_s13, %s1214_s13   ;;  %s815_s12 = sphi %s896_s12, %s1213_s12  }
  0x11   : > { %1178 = sst [smem:[#allocation12_spill]] %s855_s22  ;;  %s495_s27 = sadd.s32 4294967294, %s867_s25  }
  0x12   : > { %1179 = sst [smem:[#allocation13_spill]] %s859_s23  ;;  %p57_p0 = scmp.ne.s32.totalorder %s847_s20, %s843_s19 }
  0x13   : > { %1180 = sst [smem:[#allocation14_spill]] %s867_s25  ;;  %p58_p1 = scmp.eq.s32.totalorder %s867_s25, 0 }
  0x14   : > { %p63_p2 = scmp.ne.s32.totalorder %s843_s19, %s839_s18  ;;  %p64_p3 = scmp.eq.s32.totalorder %s494_s26, 0 }
  0x15   : > { %p970_p4 = por %p58_p1, %p57_p0  ;;  %p83_p5 = scmp.ne.s32.totalorder %s835_s17, %s831_s16 }
  0x16   : > { %p976_p6 = por %p64_p3, %p63_p2  ;;  %p89_p7 = scmp.ne.s32.totalorder %s831_s16, %s827_s15 }
  0x17   : > { %p981_p8 = por %p83_p5, %p58_p1  ;;  %p142_p9 = scmp.ne.s32.totalorder %s823_s14, %s819_s13 }
  0x18   : > { %p987_p10 = por %p89_p7, %p64_p3  ;;  %p143_p11 = scmp.eq.s32.totalorder %s494_s26, 5 }
  0x19   : > { %p148_p12 = scmp.ne.s32.totalorder %s819_s13, %s815_s12  ;;  %p149_p13 = scmp.eq.s32.totalorder %s495_s27, 5 }
  0x1a   : > { %s1184_s6 = scalar_select %p987_p10, 1, 0 }
  0x1b   : > { %p993_p0 = por %p143_p11, %p142_p9  ;;  %p997_p2 = por %p149_p13, %p148_p12 }
  0x1c   : > { %p545_p1 = scmp.lt.s32.totalorder %s867_s25, 6  ;;  %s169_s9 = sand.u32 1, %s847_s20  }
  0x1d   : > { %s1185_s7 = scalar_select %p993_p0, 1, 0 }
  0x1e   : > { %s1187_s8 = scalar_select %p997_p2, 1, 0 }
  0x1f   : > { %1186 = sst [smem:[#allocation15_spill]] %s1185_s7  ;;  %s499_s10 = sshll.u32 %s863_s24, 7 }
  0x20   : > { %1188 = sst [smem:[#allocation16_spill]] %s1187_s8  ;;  %s498_s11 = sshll.u32 %s169_s9, 3 }
  0x21   : > { %s1189_s0 = sld [smem:[#allocation19_spill]]  ;;  %s173_s28 = scalar_lea.vmem [#allocation2], %s498_s11 }
  0x22   : > { %s181_s26 = sshll.u32 %s173_s28, 4  ;;  %p1009_p3 = pnand %p545_p1, %p970_p4  ;;  %s182_s26 = int_to_ptr.vmem [resolvable:$true] %s181_s26 }
  0x23   : > { %p1015_p5 = pnand %p545_p1, %p981_p8  ;;  %p501_p7 = scmp.ge.s32.totalorder %s867_s25, 1 }
  0x24   : > { %s170_s12 = scalar_lea.sflag [#allocation3], %s169_s9  ;;  %p665_p9 = pneg %p1009_p3 }
  0x25   : > { %s676_s15 = scalar_lea.vmem %s182_s26, 128  ;;  %s869_s28 = smov [#allocation2]  }
  0x26   : > { %p677_p11 = scmp.ne.s32.totalorder %s182_s26, %s676_s15  ;;  %s681_s30 = sshll.u32 %s869_s28, 4  ;;  %s682_s30 = int_to_ptr.vmem [resolvable:$false] %s681_s30 }
  0x27   : > { %s179_s29 = scalar_lea.hbm %s1189_s0, %s499_s10  ;;  %s683_s10 = scalar_lea.vmem %s682_s30, 256 }
  0x28   : > { %p679_p12 = pnand %p677_p11, %p665_p9  ;;  %p684_p4 = scmp.lt.s32.totalorder %s182_s26, %s682_s30 }
  0x29   : > { %p685_p2 = scmp.lt.s32.totalorder %s683_s10, %s676_s15 }
  0x2a   : > { %p680_p13 = pneg %p679_p12 }
  0x2b   : > { %p686_p0 = por %p685_p2, %p684_p4 }
  0x2d   : > { %p687_p10 = pnand %p686_p0, %p680_p13 }
  0x2f   : > { %690 = shalt.err (!%p687_p10)
}
  0x30   : > { %537 = dma.hbm_to_vmem [thread:$0]  (!%p1009_p3), %s179_s29, 128, %s182_s26, %s170_s12  }
  0x31   : > { %p213_p8 = scmp.lt.s32.totalorder %s867_s25, 7  ;;  %s76_s5 = sadd.s32 1, %s835_s17 }
  0x32   : > { %s37_s11 = sadd.s32 1, %s859_s23  ;;  %s132_s18 = sadd.s32 1, %s823_s14 }
  0x33   : > { %p1028_p2 = pnand %p501_p7, %p213_p8  ;;  %p39_p10 = scmp.ge.s32.totalorder %s37_s11, 3 }
  0x34   : > { %s188_s27 = sand.u32 1, %s835_s17   ;;  %s1194_s28 = sadd.s32 1, %s863_s24 }
  0x35   : > { %s524_s15 = smul.u32 24, %s188_s27  ;;  %s1226_s11 = smov (%p39_p10, %s37_s11), 0 }
  0x36   : > { %1193 = sst [smem:[#allocation17_spill]] %s1226_s11  ;;  %s1228_s28 = smov (!%p39_p10, %s1194_s28), %s863_s24 }
  0x37   : > { %s73_s12 = ssub.s32 %s859_s23, %s1226_s11  ;;  %p43_p0 = scmp.ge.s32.totalorder %s1228_s28, 2 }
  0x38   : > { %p74_p1 = scmp.eq.s32.totalorder %s73_s12, 0  ;;  %s525_s29 = smul.u32 384, %s859_s23 }
  0x39   : > { %s192_s26 = scalar_lea.vmem [#allocation5], %s524_s15  ;;  %s1230_s28 = smov (%p43_p0, %s1228_s28), 0 }
  0x3a   : > { %s199_s30 = sshll.u32 %s192_s26, 4  ;;  %1195 = sst [smem:[#allocation18_spill]] %s1230_s28  ;;  %s200_s30 = int_to_ptr.vmem [resolvable:$true] %s199_s30 }
  0x3b   : > { %s1046_s10 = scalar_select %p74_p1, %s835_s17, %s76_s5  }
  0x3c   : > { %s45_s0 = ssub.s32 %s863_s24, %s1230_s28  ;;  %s198_s7 = scalar_lea.hbm %s1159_s1, %s525_s29 }
  0x3d   : > { %p48_p3 = scmp.eq.s32.totalorder %s45_s0, 0  ;;  %s127_s2 = sor.u32 %s73_s12, %s45_s0 }
  0x3e   : > { %p130_p7 = scmp.eq.s32.totalorder %s127_s2, 0  ;;  %s1196_s11 = sadd.s32 1, %s847_s20 }
  0x3f   : > { %s1056_s22 = scalar_select %p48_p3, %s847_s20, %s1196_s11  }
  0x40   : > { %s1059_s23 = scalar_select %p130_p7, %s823_s14, %s132_s18  }
  0x41   : > { %s189_s15 = scalar_lea.sflag [#allocation6], %s188_s27  ;;  %p693_p9 = pneg %p1015_p5 }
  0x42   : > { %s704_s26 = scalar_lea.vmem %s200_s30, 384  ;;  %s870_s5 = smov [#allocation5]  }
  0x43   : > { %p705_p11 = scmp.ne.s32.totalorder %s200_s30, %s704_s26  ;;  %s709_s28 = sshll.u32 %s870_s5, 4  ;;  %s710_s28 = int_to_ptr.vmem [resolvable:$false] %s709_s28 }
  0x44   : > { %s711_s3 = scalar_lea.vmem %s710_s28, 768  ;;  %p712_p4 = scmp.lt.s32.totalorder %s200_s30, %s710_s28 }
  0x45   : > { %p707_p12 = pnand %p705_p11, %p693_p9  ;;  %p713_p8 = scmp.lt.s32.totalorder %s711_s3, %s704_s26 }
  0x47   : > { %p708_p13 = pneg %p707_p12  ;;  %p714_p10 = por %p713_p8, %p712_p4 }
  0x49   : > { %p715_p0 = pnand %p714_p10, %p708_p13 }
  0x4b   : > { %718 = shalt.err (!%p715_p0)
}
  0x4c   : > { %s871_s0 = smov 128   ;;  %s872_s2 = smov 8  }
  0x4d   : > { %540 = dma.hbm_to_vmem [thread:$0]  (!%p1015_p5), %s198_s7, 384, %s200_s30, %s189_s15, %s871_s0, %s871_s0, %s872_s2  }
  0x4e   : > { %217 = sbr.rel (%p1028_p2) target bundleno = 304 (0x130), region = 32  ;;  %s219_s25 = sand.u32 (!%p1028_p2), 1, %s843_s19  }
  0x4f   : > { %s502_s11 = sshll.u32 (!%p1028_p2), %s219_s25, 3  ;;  %s220_s18 = scalar_lea.sflag (!%p1028_p2), [#allocation3], %s219_s25 }
  0x50   : > { %s223_s27 = scalar_lea.vmem (!%p1028_p2), [#allocation2], %s502_s11 }
  0x53   : > { %802 = dma.done.wait (%p976_p6), %s220_s18, 128  }
  0x54   : > { %804 = vsyncadd (%p976_p6), %s220_s18, 4294967168  ;;  %s228_s28 = sand.u32 1, %s831_s16   ;;  %p1197_p5 = scmp.ne.s32.totalorder %s1184_s6, 0 }
  0x55   : > { %s526_s12 = smul.u32 24, %s228_s28  ;;  %s229_s8 = scalar_lea.sflag [#allocation6], %s228_s28 }
  0x57   : > { %s232_s7 = scalar_lea.vmem [#allocation5], %s526_s12 }
  0x58   : > { %806 = dma.done.wait (%p1197_p5), %s229_s8, 384  }
  0x59   : > { %808 = vsyncadd (%p1197_p5), %s229_s8, 4294966912  ;;  %v873_v0 = vmov 0.0   ;;  %vm874_vm0 = vmmov 0   ;;  %s1198_s4 = sld [smem:[#allocation12_spill]]  ;;  %vm281_vm1 = vcmask 1044480   ;;  %v268_v2 = vld [vmem:[%s232_s7 + $0x8] sm:$0xff] }
  0x5a   : > { %515 = vmatprep.subr.mxu0 %v873_v0  ;;  %521 = vmatprep.mubr.msk.f32.mxu0 %vm874_vm0, %v873_v0  ;;  %v269_v1 = vld [vmem:[%s232_s7 + $0x10] sm:$0x1f]  ;;  %v267_v3 = vld [vmem:[%s232_s7] sm:$0xff]  ;;  %vm277_vm2 = vcmask 171008   ;;  %p263_p6 = scmp.lt.s32.totalorder %s851_s21, 2  ;;  %s260_s6 = sand.u32 1, %s819_s13  }
  0x5b   : > { %516 = vmatpush3.msk.msra.mxu0 %vm281_vm1, %v269_v1  ;;  %v266_v4 = vld [vmem:[%s223_s27] sm:$0xff]  ;;  %s503_s30 = sshll.u32 %s260_s6, 3  ;;  %s1199_s5 = sld [smem:[#allocation20_spill]]  ;;  %vm355_vm3 = vcmask 261120  }
  0x5c   : > { %517 = vmatprep.subr.mxu0 %v873_v0  ;;  %s264_s9 = scalar_select %p263_p6, %s851_s21, 2 }
  0x5d   : > { %518 = vmatpush3.msra.mxu0 %v268_v2  ;;  %s1200_s0 = sld [smem:[#allocation15_spill]]  ;;  %s262_s11 = scalar_lea.vmem [#allocation7], %s503_s30 }
  0x5e   : > { %519 = vmatprep.subr.mxu0 %v873_v0  ;;  %s374_s18 = sshll.u32 %s262_s11, 4  ;;  %s1201_s12 = sld [smem:[#allocation21_spill]]  ;;  %s375_s18 = int_to_ptr.vmem [resolvable:$true] %s374_s18 }
  0x5f   : > { %520 = vmatpush3.msra.mxu0 %v267_v3  ;;  %s527_s29 = smul.u32 3, %s1198_s4  ;;  %s358_s4 = scalar_lea.sflag [#allocation4], %s260_s6 }
  0x60   : > { %522 = vmatmul.mubr.msk.f32.vlgmr.msra.gmra.mxu0 %vm277_vm2, %v266_v4  ;;  %s719_s15 = scalar_lea.vmem %s375_s18, 128 }
  0x61   : > { %s265_s3 = scalar_lea.vmem %s1199_s5, %s264_s9  ;;  %s370_s2 = sadd.s32 %s851_s21, %s527_s29 }
  0x62   : > { %v504_v5 = vld [vmem:[%s265_s3] ss:$0 sm:$0xff]  ;;  %s508_s25 = sshll.u32 %s370_s2, 7  ;;  %p720_p2 = scmp.ne.s32.totalorder %s375_s18, %s719_s15 }
  0x63   : > { %p1203_p1 = scmp.ne.s32.totalorder %s1200_s0, 0  ;;  %s875_s21 = smov [#allocation7]  }
  0x64   : > { %s1202_s8 = smov %s1201_s12  ;;  %s1088_s7 = scalar_lea.hbm %s1201_s12, %s508_s25 }
  0x65   : > { %p721_p3 = pnand %p720_p2, %p1203_p1  ;;  %s723_s9 = sshll.u32 %s875_s21, 4  ;;  %s724_s9 = int_to_ptr.vmem [resolvable:$false] %s723_s9 }
  0x66   : > { %s725_s29 = scalar_lea.vmem %s724_s9, 256  ;;  %p726_p9 = scmp.lt.s32.totalorder %s375_s18, %s724_s9 }
  0x67   : > { %p722_p7 = pneg %p721_p3  ;;  %p727_p11 = scmp.lt.s32.totalorder %s725_s29, %s719_s15 }
  0x69   : > { %p728_p12 = por %p727_p11, %p726_p9 }
  0x6b   : > { %p729_p13 = pnand %p728_p12, %p722_p7 }
 0x120   : > { %v351_v6 = vpop.f32.mrf.mxu0 }
 0x121   : > { %v352_v7 = vadd.f32 %v504_v5, %v351_v6 }
 0x122   : > { %v523_v8 = vpop.f32.mrf.mxu0 }
 0x123   : > { %356 = vst.msk [vmem:[%s262_s11] sm:$0xff] %vm355_vm3, %v352_v7 }
 0x124   : > { %732 = shalt.err (!%p729_p13)
}
 0x125   : > { %s733_s30 = scalar_lea.hbm %s1088_s7, 128  ;;  %s737_s5 = scalar_lea.hbm %s1202_s8, 768 }
 0x126   : > { %p734_p4 = scmp.ne.s32.totalorder %s1088_s7, %s733_s30  ;;  %p738_p0 = scmp.lt.s32.totalorder %s1088_s7, %s1202_s8 }
 0x127   : > { %p739_p5 = scmp.lt.s32.totalorder %s737_s5, %s733_s30 }
 0x128   : > { %p735_p8 = pnand %p734_p4, %p1203_p1 }
 0x129   : > { %p740_p6 = por %p739_p5, %p738_p0 }
 0x12a   : > { %p736_p10 = pneg %p735_p8 }
 0x12c   : > { %p741_p2 = pnand %p740_p6, %p736_p10 }
 0x12e   : > { %744 = shalt.err (!%p741_p2)
}
 0x12f   : > { %532 = dma.vmem_to_hbm [thread:$0]  (%p1203_p1), %s375_s18, 128, %s1088_s7, %s358_s4  }
 0x130 PF: > { %s1204_s25 = sld [smem:[#allocation14_spill]] }
 0x131   : > { %s1205_s11 = sld [smem:[#allocation11_spill]] }
 0x132   : > { %s1206_s27 = sld [smem:[#allocation16_spill]] }
 0x136   : > { %p546_p3 = scmp.ge.s32.totalorder %s1204_s25, 2 }
 0x137   : > { %s386_s28 = sand.u32 1, %s1205_s11  }
 0x138   : > { %p1207_p7 = scmp.ne.s32.totalorder %s1206_s27, 0  ;;  %s387_s12 = scalar_lea.sflag [#allocation4], %s386_s28 }
 0x13a   : > { %p542_p9 = pnand %p546_p3, %p1207_p7 }
 0x13c   : > { %p543_p11 = pneg %p542_p9 }
 0x13e   : > { %810 = dma.done.wait (%p543_p11), %s387_s12, 128  }
 0x13f   : > { %812 = vsyncadd (%p543_p11), %s387_s12, 4294967168  ;;  %s22_s25 = sadd.s32 1, %s1204_s25   ;;  %s1209_s21 = sld [smem:[#allocation13_spill]] }
 0x140   : > { %p1111_p12 = scmp.ge.s32.totalorder %s22_s25, 8   ;;  %s1210_s0 = sld [smem:[#allocation17_spill]] }
 0x141   : > { %s1211_s7 = sld [smem:[#allocation18_spill]]  ;;  %s1213_s12 = smov %s819_s13 }
 0x142   : > { %s1214_s13 = smov %s823_s14  ;;  %s1215_s14 = smov %s1059_s23 }
 0x143   : > { %s1216_s15 = smov %s831_s16  ;;  %s1217_s16 = smov %s835_s17 }
 0x144   : > { %s1218_s17 = smov %s1046_s10  ;;  %s1219_s18 = smov %s843_s19 }
 0x145   : > { %s1220_s19 = smov %s847_s20  ;;  %s1221_s20 = smov %s1056_s22 }
 0x146   : > { %s1222_s22 = smov %s863_s24  ;;  %s1223_s23 = smov %s1210_s0 }
 0x147   : > { %s1224_s24 = smov %s1211_s7  ;;  %21 = sbr.rel (!%p1111_p12) target bundleno = 16 (0x10), region = 93 }
 0x14c   :  { %392 = vsyncpa [#allocation3], 1 }
 0x14d   :  { %394 = vsyncpa [#allocation3 + $0x1], 1 }
 0x14e   :  { %395 = vsyncpa [#allocation6], 1 }
 0x14f   :  { %397 = vsyncpa [#allocation6 + $0x1], 1 }
 0x150   :  { %398 = vsyncpa [#allocation4], 1 }
 0x151   :  { %400 = vsyncpa [#allocation4 + $0x1], 1 }

</bundles_post_ra>
